<compile_context>
chip_gen: v5e
topology: v5e:2x2
jax: 0.10.0
libtpu: 0.0.40
codegen_flags: <defaults>
</compile_context>

<pallas_src>
import jax
import jax.numpy as jnp
from jax.experimental import pallas as pl
from jax.experimental.pallas import tpu as pltpu

LN_EPS = 1e-12


def gph_self_output_kernel(x_ref, res_ref, w_ref, b_ref, g_ref, beta_ref, o_ref):
    # x_ref:    [TM, H]  hidden_states tile (flattened batch*seq rows)
    # res_ref:  [TM, H]  input_tensor (residual) tile
    # w_ref:    [H, H]   dense weight, pre-transposed to (in, out) — resident
    # b_ref:    [1, H]   dense bias                                — resident
    # g_ref:    [1, H]   LayerNorm gamma                           — resident
    # beta_ref: [1, H]   LayerNorm beta                            — resident
    # o_ref:    [TM, H]  output tile

    # Dense: MXU matmul in the native input dtype, f32 accumulation.
    y = jnp.dot(x_ref[...], w_ref[...], preferred_element_type=jnp.float32)

    # Bias + (dropout == identity at inference) + residual, in f32.
    z = y + b_ref[...].astype(jnp.float32) + res_ref[...].astype(jnp.float32)

    # LayerNorm over the last dim, eps = 1e-12 (biased variance, like torch).
    # Single-pass statistics: the two row reductions (sum z, sum z^2) are
    # independent, so no serial XLU dependency and no second TMxH VPU pass.
    mean = jnp.mean(z, axis=-1, keepdims=True)
    mean_sq = jnp.mean(z * z, axis=-1, keepdims=True)
    var = jnp.maximum(mean_sq - mean * mean, 0.0)   # guard mild cancellation
    zn = (z - mean) * jax.lax.rsqrt(var + LN_EPS)
    out = zn * g_ref[...].astype(jnp.float32) + beta_ref[...].astype(jnp.float32)

    o_ref[...] = out.astype(o_ref.dtype)


def gph_self_output(hidden_states, input_tensor, weight_t, bias, gamma, beta,
                    *, block_m=512, stream_buffers=2,
                    vmem_budget_bytes=48 * 1024 * 1024):
    """Fused dense + dropout(identity) + residual + LayerNorm.

    hidden_states, input_tensor: [B, S, H]
    weight_t: [H_in, H_out]  (nn.Linear weight already transposed, once, at load)
    bias, gamma, beta: [H]
    """
    B, S, H = hidden_states.shape
    M = B * S
    act_dtype = hidden_states.dtype

    # Keep both MXU operands in the activation dtype (bf16-in / f32-accumulate).
    # In production do this cast once at model load, not per call.
    if weight_t.dtype != act_dtype:
        weight_t = weight_t.astype(act_dtype)

    x2 = hidden_states.reshape(M, H)
    r2 = input_tensor.reshape(M, H)
    b2 = bias.reshape(1, H)
    g2 = gamma.reshape(1, H)
    be2 = beta.reshape(1, H)

    act_isz = jnp.dtype(act_dtype).itemsize
    w_isz = jnp.dtype(weight_t.dtype).itemsize
    prm_isz = jnp.dtype(bias.dtype).itemsize

    sub = 16 if act_dtype == jnp.bfloat16 else 8

    # ---- pick the row tile (H kept whole so the LN reduction never splits) --
    tm = min(block_m, M)
    # v7x: guarantee >= 2 grid steps so the "parallel" M axis feeds both TCs.
    if M > 2 * sub:
        tm = min(tm, max(sub, ((M // 2) // sub) * sub))
    if tm >= sub:
        tm -= tm % sub            # sublane-aligned
    else:
        tm = M                    # tiny shapes: block dim == full dim is legal

    # Resident (single-buffered) operands: weight + bias/gamma/beta.
    resident = H * H * w_isz + 3 * H * prm_isz

    def vmem_need(t):
        streamed = 3 * stream_buffers * t * H * act_isz   # x, res, out buffers
        f32_tmp = 3 * t * H * 4                           # y/z/out f32 temporaries
        return streamed + f32_tmp + resident

    # Shrink the tile until it fits the budget (matters on v5e's 16 MiB scoped
    # default and v7x's 64 MiB physical VMEM).
    while tm > sub and vmem_need(tm) > vmem_budget_bytes:
        tm = max(sub, ((tm // 2) // sub) * sub)

    # Ragged last block is fine without padding: matmul and LayerNorm are
    # row-local, and Pallas masks the stores of out-of-range rows.
    grid_m = pl.cdiv(M, tm)

    # TODO(synk): if H grows so large that the resident [H, H] weight itself
    # approaches the VMEM budget (H >= ~2048 f32 / ~4096 bf16 on v7x), switch
    # to tiling the weight over a K grid axis with an f32 accumulator scratch.

    vmem_limit = int(min(max(2 * vmem_need(tm), 8 << 20), 56 << 20))

    stream_mode = pl.Buffered(stream_buffers) if stream_buffers != 2 else None
    resident_mode = pl.Buffered(1)   # constant index_map -> no double buffer

    cost = pl.CostEstimate(
        flops=2 * M * H * H,
        transcendentals=0,
        bytes_accessed=3 * M * H * act_isz + H * H * w_isz + 3 * H * prm_isz,
    )

    out = pl.pallas_call(
        gph_self_output_kernel,
        out_shape=jax.ShapeDtypeStruct((M, H), act_dtype),
        grid=(grid_m,),
        in_specs=[
            pl.BlockSpec((tm, H), lambda i: (i, 0), pipeline_mode=stream_mode),
            pl.BlockSpec((tm, H), lambda i: (i, 0), pipeline_mode=stream_mode),
            pl.BlockSpec((H, H), lambda i: (0, 0), pipeline_mode=resident_mode),
            pl.BlockSpec((1, H), lambda i: (0, 0), pipeline_mode=resident_mode),
            pl.BlockSpec((1, H), lambda i: (0, 0), pipeline_mode=resident_mode),
            pl.BlockSpec((1, H), lambda i: (0, 0), pipeline_mode=resident_mode),
        ],
        out_specs=pl.BlockSpec((tm, H), lambda i: (i, 0), pipeline_mode=stream_mode),
        compiler_params=pltpu.CompilerParams(
            dimension_semantics=("parallel",),   # v7x: shard M tiles across 2 TCs
            vmem_limit_bytes=vmem_limit,
        ),
        cost_estimate=cost,
    )(x2, r2, weight_t, b2, g2, be2)

    return out.reshape(B, S, H)


def _reference(hidden_states, input_tensor, weight, bias, gamma, beta):
    y = hidden_states @ weight.T + bias
    z = y + input_tensor
    mu = jnp.mean(z, axis=-1, keepdims=True)
    var = jnp.mean((z - mu) ** 2, axis=-1, keepdims=True)
    return (z - mu) / jnp.sqrt(var + LN_EPS) * gamma + beta


if __name__ == "__main__":
    H = 32  # hidden_size

    key = jax.random.PRNGKey(0)
    k1, k2, k3, k4, k5, k6 = jax.random.split(key, 6)

    # Deterministic parameter init (matches nn.Linear / nn.LayerNorm shapes).
    bound = 1.0 / (H ** 0.5)
    weight = jax.random.uniform(k3, (H, H), minval=-bound, maxval=bound,
                                dtype=jnp.float32)   # torch layout [out, in]
    bias = jax.random.uniform(k4, (H,), minval=-bound, maxval=bound,
                              dtype=jnp.float32)
    gamma = jnp.ones((H,), dtype=jnp.float32)   # LayerNorm weight
    beta = jnp.zeros((H,), dtype=jnp.float32)   # LayerNorm bias

    # Transpose once ("at model load"), not per call.
    weight_t = jnp.asarray(weight.T)  # [H_in, H_out]

    # --- test 1: small BERT-ish shape (single grid step) ---------------------
    B, S = 2, 8
    hidden_states = jax.random.normal(k1, (B, S, H), dtype=jnp.float32)
    input_tensor = jax.random.normal(k2, (B, S, H), dtype=jnp.float32)

    out = gph_self_output(hidden_states, input_tensor, weight_t, bias, gamma, beta)
    out = jax.block_until_ready(out)
    ref = _reference(hidden_states, input_tensor, weight, bias, gamma, beta)
    assert out.shape == (B, S, H)
    assert jnp.allclose(out, ref, atol=1e-4, rtol=1e-4), "mismatch vs reference (test 1)"

    # --- test 2: M not divisible by the row tile (exercises masked edge block,
    # multi-step grid, no jnp.pad) ---------------------------------------------
    B2, S2 = 2, 25
    hs2 = jax.random.normal(k5, (B2, S2, H), dtype=jnp.float32)
    it2 = jax.random.normal(k6, (B2, S2, H), dtype=jnp.float32)

    out2 = gph_self_output(hs2, it2, weight_t, bias, gamma, beta)
    out2 = jax.block_until_ready(out2)
    ref2 = _reference(hs2, it2, weight, bias, gamma, beta)
    assert out2.shape == (B2, S2, H)
    assert jnp.allclose(out2, ref2, atol=1e-4, rtol=1e-4), "mismatch vs reference (test 2)"

    print("KERNEL_OK")
</pallas_src>

<mosaic_0001>
module attributes {stable_mosaic.version = 11 : i64} {
  func.func @gph_self_output_kernel(%arg0: i32, %arg1: memref<16x32xf32, #tpu.memory_space<vmem>>, %arg2: memref<16x32xf32, #tpu.memory_space<vmem>>, %arg3: memref<32x32xf32, #tpu.memory_space<vmem>>, %arg4: memref<1x32xf32, #tpu.memory_space<vmem>>, %arg5: memref<1x32xf32, #tpu.memory_space<vmem>>, %arg6: memref<1x32xf32, #tpu.memory_space<vmem>>, %arg7: memref<16x32xf32, #tpu.memory_space<vmem>>) attributes {dimension_semantics = [#tpu.dimension_semantics<parallel>], iteration_bounds = array<i64: 1>, scalar_prefetch = 0 : i64, scratch_operands = 0 : i64, tpu.core_type = #tpu.core_type<tc>, window_params = [{transform_indices = @transform_0, window_bounds = array<i64: 16, 32>}, {transform_indices = @transform_1, window_bounds = array<i64: 16, 32>}, {pipeline_mode = #tpu.pipeline_mode<synchronous>, transform_indices = @transform_2, window_bounds = array<i64: 32, 32>}, {pipeline_mode = #tpu.pipeline_mode<synchronous>, transform_indices = @transform_3, window_bounds = array<i64: 1, 32>}, {pipeline_mode = #tpu.pipeline_mode<synchronous>, transform_indices = @transform_4, window_bounds = array<i64: 1, 32>}, {pipeline_mode = #tpu.pipeline_mode<synchronous>, transform_indices = @transform_5, window_bounds = array<i64: 1, 32>}, {transform_indices = @transform_6, window_bounds = array<i64: 16, 32>}]} {
    %c0 = arith.constant 0 : index
    %c0_0 = arith.constant 0 : index
    %0 = vector.load %arg1[%c0, %c0_0] : memref<16x32xf32, #tpu.memory_space<vmem>>, vector<16x32xf32>
    %c0_1 = arith.constant 0 : index
    %c0_2 = arith.constant 0 : index
    %1 = vector.load %arg3[%c0_1, %c0_2] : memref<32x32xf32, #tpu.memory_space<vmem>>, vector<32x32xf32>
    %cst = arith.constant dense<0.000000e+00> : vector<16x32xf32>
    %2 = tpu.matmul %0, %1, %cst {dimension_numbers = #tpu.dot_dimension_numbers<[1], [0], [0], [1], [0, 0, 1, 1], [], []>} : vector<16x32xf32>, vector<32x32xf32>, vector<16x32xf32> -> vector<16x32xf32>
    %c0_3 = arith.constant 0 : index
    %c0_4 = arith.constant 0 : index
    %3 = vector.load %arg4[%c0_3, %c0_4] : memref<1x32xf32, #tpu.memory_space<vmem>>, vector<1x32xf32>
    %4 = vector.broadcast %3 : vector<1x32xf32> to vector<16x32xf32>
    %5 = arith.addf %2, %4 : vector<16x32xf32>
    %c0_5 = arith.constant 0 : index
    %c0_6 = arith.constant 0 : index
    %6 = vector.load %arg2[%c0_5, %c0_6] : memref<16x32xf32, #tpu.memory_space<vmem>>, vector<16x32xf32>
    %7 = arith.addf %5, %6 : vector<16x32xf32>
    %cst_7 = arith.constant dense<0.000000e+00> : vector<16xf32>
    %8 = vector.multi_reduction <add>, %7, %cst_7 [1] : vector<16x32xf32> to vector<16xf32>
    %9 = vector.shape_cast %8 : vector<16xf32> to vector<16x1xf32>
    %cst_8 = arith.constant 3.200000e+01 : f32
    %10 = vector.broadcast %cst_8 : f32 to vector<16x1xf32>
    %11 = arith.divf %9, %10 : vector<16x1xf32>
    %12 = arith.mulf %7, %7 : vector<16x32xf32>
    %cst_9 = arith.constant dense<0.000000e+00> : vector<16xf32>
    %13 = vector.multi_reduction <add>, %12, %cst_9 [1] : vector<16x32xf32> to vector<16xf32>
    %14 = vector.shape_cast %13 : vector<16xf32> to vector<16x1xf32>
    %cst_10 = arith.constant 3.200000e+01 : f32
    %15 = vector.broadcast %cst_10 : f32 to vector<16x1xf32>
    %16 = arith.divf %14, %15 : vector<16x1xf32>
    %17 = arith.mulf %11, %11 : vector<16x1xf32>
    %18 = arith.subf %16, %17 : vector<16x1xf32>
    %cst_11 = arith.constant 0.000000e+00 : f32
    %19 = vector.broadcast %cst_11 : f32 to vector<16x1xf32>
    %20 = arith.maximumf %18, %19 : vector<16x1xf32>
    %21 = vector.broadcast %11 : vector<16x1xf32> to vector<16x32xf32>
    %22 = arith.subf %7, %21 : vector<16x32xf32>
    %cst_12 = arith.constant 9.99999996E-13 : f32
    %23 = vector.broadcast %cst_12 : f32 to vector<16x1xf32>
    %24 = arith.addf %20, %23 : vector<16x1xf32>
    %25 = math.rsqrt %24 : vector<16x1xf32>
    %26 = vector.broadcast %25 : vector<16x1xf32> to vector<16x32xf32>
    %27 = arith.mulf %22, %26 : vector<16x32xf32>
    %c0_13 = arith.constant 0 : index
    %c0_14 = arith.constant 0 : index
    %28 = vector.load %arg5[%c0_13, %c0_14] : memref<1x32xf32, #tpu.memory_space<vmem>>, vector<1x32xf32>
    %29 = vector.broadcast %28 : vector<1x32xf32> to vector<16x32xf32>
    %30 = arith.mulf %27, %29 : vector<16x32xf32>
    %c0_15 = arith.constant 0 : index
    %c0_16 = arith.constant 0 : index
    %31 = vector.load %arg6[%c0_15, %c0_16] : memref<1x32xf32, #tpu.memory_space<vmem>>, vector<1x32xf32>
    %32 = vector.broadcast %31 : vector<1x32xf32> to vector<16x32xf32>
    %33 = arith.addf %30, %32 : vector<16x32xf32>
    %c0_17 = arith.constant 0 : index
    %c0_18 = arith.constant 0 : index
    %34 = vector.load %arg7[%c0_17, %c0_18] : memref<16x32xf32, #tpu.memory_space<vmem>>, vector<16x32xf32>
    tpu.vector_store %arg7[%c0_17, %c0_18], %33 {strides = array<i32>} : memref<16x32xf32, #tpu.memory_space<vmem>>, vector<16x32xf32>,
    return
  }
  func.func @transform_0(%arg0: i32) -> (i32, i32) {
    %c0_i32 = arith.constant 0 : i32
    %c0_i32_0 = arith.constant 0 : i32
    return %arg0, %c0_i32 : i32, i32
  }
  func.func @transform_1(%arg0: i32) -> (i32, i32) {
    %c0_i32 = arith.constant 0 : i32
    %c0_i32_0 = arith.constant 0 : i32
    return %arg0, %c0_i32 : i32, i32
  }
  func.func @transform_2(%arg0: i32) -> (i32, i32) {
    %c0_i32 = arith.constant 0 : i32
    %c0_i32_0 = arith.constant 0 : i32
    %c0_i32_1 = arith.constant 0 : i32
    return %c0_i32, %c0_i32_0 : i32, i32
  }
  func.func @transform_3(%arg0: i32) -> (i32, i32) {
    %c0_i32 = arith.constant 0 : i32
    %c0_i32_0 = arith.constant 0 : i32
    %c0_i32_1 = arith.constant 0 : i32
    return %c0_i32, %c0_i32_0 : i32, i32
  }
  func.func @transform_4(%arg0: i32) -> (i32, i32) {
    %c0_i32 = arith.constant 0 : i32
    %c0_i32_0 = arith.constant 0 : i32
    %c0_i32_1 = arith.constant 0 : i32
    return %c0_i32, %c0_i32_0 : i32, i32
  }
  func.func @transform_5(%arg0: i32) -> (i32, i32) {
    %c0_i32 = arith.constant 0 : i32
    %c0_i32_0 = arith.constant 0 : i32
    %c0_i32_1 = arith.constant 0 : i32
    return %c0_i32, %c0_i32_0 : i32, i32
  }
  func.func @transform_6(%arg0: i32) -> (i32, i32) {
    %c0_i32 = arith.constant 0 : i32
    %c0_i32_0 = arith.constant 0 : i32
    return %arg0, %c0_i32 : i32, i32
  }
}

</mosaic_0001>

<bundles_post_ra>
// kernel: tpu_custom_call.1
= control target key start
LH: loop header
LB: loop body
LE: loop exit
PB: predicated region body
PF: predicated region fallthrough
CT: control target
= control target key end

     0   :  { %11 = vsyncpa [#allocation3], 0  ;;  %s419_s0 = inlined_call_operand.hbm [shape: f32[16,32], index: 0, kind: input, shape index: {}]   ;;  %s420_s1 = inlined_call_operand.hbm [shape: f32[16,32], index: 1, kind: input, shape index: {}]   ;;  %s421_s2 = inlined_call_operand.hbm [shape: f32[32,32], index: 2, kind: input, shape index: {}]   ;;  %s422_s3 = inlined_call_operand.vmem [shape: f32[1,32], index: 3, kind: input, shape index: {}]   ;;  %s423_s4 = inlined_call_operand.vmem [shape: f32[1,32], index: 4, kind: input, shape index: {}]   ;;  %s424_s5 = inlined_call_operand.vmem [shape: f32[1,32], index: 5, kind: input, shape index: {}]   ;;  %s425_s6 = inlined_call_operand.hbm [shape: f32[16,32], index: 6, kind: output, shape index: {}]  }
   0x1   :  { %12 = vsyncpa [#allocation6], 0 }
   0x2   :  { %13 = vsyncpa [#allocation4], 0  ;;  %s31_s23 = sshll.u32 %s420_s1, 4  ;;  %s330_s24 = smov [#allocation5]   ;;  %s32_s23 = int_to_ptr.hbm [resolvable:$true] %s31_s23 }
   0x3   :  { %s33_s25 = sshll.u32 %s330_s24, 4  ;;  %s18_s28 = sshll.u32 %s419_s0, 4  ;;  %s34_s25 = int_to_ptr.vmem [resolvable:$true] %s33_s25  ;;  %s19_s28 = int_to_ptr.hbm [resolvable:$true] %s18_s28 }
   0x4   :  { %s331_s29 = smov 128   ;;  %s332_s30 = smov 8  }
   0x5   :  { %39 = dma.hbm_to_vmem [thread:$0]  %s32_s23, 256, %s34_s25, [#allocation6], %s331_s29, %s331_s29, %s332_s30  }
   0x6   :  { %s333_s7 = smov [#allocation2]   ;;  %s44_s1 = sshll.u32 %s421_s2, 4  ;;  %s45_s1 = int_to_ptr.hbm [resolvable:$true] %s44_s1 }
   0x7   :  { %s20_s8 = sshll.u32 %s333_s7, 4  ;;  %s334_s0 = smov [#allocation7]   ;;  %s21_s8 = int_to_ptr.vmem [resolvable:$true] %s20_s8 }
   0x8   :  { %26 = dma.hbm_to_vmem [thread:$0]  %s19_s28, 256, %s21_s8, [#allocation3], %s331_s29, %s331_s29, %s332_s30  }
   0x9   :  { %s46_s11 = sshll.u32 %s334_s0, 4  ;;  %s47_s11 = int_to_ptr.vmem [resolvable:$true] %s46_s11 }
   0xa   :  { %52 = dma.hbm_to_vmem [thread:$0]  %s45_s1, 512, %s47_s11, [#allocation6], %s331_s29, %s331_s29, %s332_s30  }
   0xb   :  { %324 = dma.done.wait [#allocation3], 256  }
   0xc   :  { %325 = vsyncadd [#allocation3], 4294967040 }
   0xd   :  { %326 = dma.done.wait [#allocation6], 768  }
   0xe   :  { %327 = vsyncadd [#allocation6], 4294966528  ;;  %v76_v0 = vld [vmem:[#allocation7 + $0x18] sm:$0xff]  ;;  %v75_v1 = vld [vmem:[#allocation7 + $0x10] sm:$0xff]  ;;  %vm81_vm0 = vcmask 261120   ;;  %v335_v21 = vmov 32.0  }
   0xf   :  { %100 = vmatpush.msra.mxu0 %v76_v0  ;;  %208 = vmatpush.msra.mxu1 %v76_v0  ;;  %v74_v2 = vld [vmem:[#allocation7 + $0x8] sm:$0xff]  ;;  %v73_v3 = vld [vmem:[#allocation7] sm:$0xff]  ;;  %v111_v8 = vld [vmem:[#allocation5] sm:$0xff]  ;;  %222 = vrcp.f32 %v335_v21 }
  0x10   :  { %v71_v4 = vld [vmem:[#allocation2] sm:$0xff]  ;;  %v72_v5 = vld [vmem:[#allocation2 + $0x8] sm:$0xff]  ;;  %v112_v12 = vld [vmem:[#allocation5 + $0x8] sm:$0xff] }
  0x11   :  { %101 = vmatpush.msra.mxu0 %v75_v1  ;;  %209 = vmatpush.msra.mxu1 %v75_v1  ;;  %v219_v6 = vld [vmem:[%s422_s3] ss:$0 sm:$0xff] }
  0x12   :  { %v220_v53 = vld [vmem:[%s423_s4] ss:$0 sm:$0xff]  ;;  %s336_s4 = smov [#allocation8]  }
  0x13   :  { %102 = vmatpush.msra.mxu0 %v74_v2  ;;  %210 = vmatpush.msra.mxu1 %v74_v2  ;;  %v221_v57 = vld [vmem:[%s424_s5] ss:$0 sm:$0xff]  ;;  %s190_s16 = sshll.u32 %s336_s4, 4  ;;  %s192_s5 = sshll.u32 %s425_s6, 4  ;;  %s191_s16 = int_to_ptr.vmem [resolvable:$true] %s190_s16  ;;  %s193_s5 = int_to_ptr.hbm [resolvable:$true] %s192_s5 }
  0x15   :  { %103 = vmatpush.msra.mxu0 %v73_v3  ;;  %211 = vmatpush.msra.mxu1 %v73_v3  ;;  %v223_v22 = vpop.eup %222 }
  0x16   :  { %206 = vmatmul.msk.f32.vlgmr.msra.gmra.mxu0 %vm81_vm0, %v71_v4  ;;  %207 = vmatmul.msk.f32.vlgmr.msra.gmra.mxu1 %vm81_vm0, %v72_v5  ;;  %v122_v23 = vmul.f32 32.0, %v223_v22  ;;  %vm126_vm1 = vweird.f32 %v223_v22 }
  0x18   :  { %v123_v24 = vsub.f32 1.0, %v122_v23 }
  0x1a   :  { %v124_v25 = vmul.f32 %v223_v22, %v123_v24 }
  0x1c   :  { %v125_v26 = vadd.f32 %v223_v22, %v124_v25 }
  0x1e   :  { %v127_v27 = vsel %vm126_vm1, %v223_v22, %v125_v26 }
  0x93   :  { %v105_v7 = vpop.f32.mrf.mxu0  ;;  %v108_v9 = vpop.f32.mrf.mxu1 }
  0x94   :  { %v106_v10 = vadd.f32 %v219_v6, %v105_v7  ;;  %v109_v11 = vadd.f32 %v219_v6, %v108_v9 }
  0x96   :  { %v113_v13 = vadd.f32 %v111_v8, %v106_v10  ;;  %v396_v15 = vadd.f32 %v112_v12, %v109_v11 }
  0x98   :  { %v115_v14 = vsel %vm81_vm0, %v113_v13, 0.0  ;;  %v130_v16 = vmul.f32 %v113_v13, %v113_v13  ;;  %v131_v18 = vmul.f32 %v396_v15, %v396_v15  ;;  %v118_v19 = vsel %vm81_vm0, %v396_v15, 0.0 }
  0x99   :  { %116 = vadd.xlane.f32.xlu0 %v115_v14 }
  0x9a   :  { %v132_v17 = vsel %vm81_vm0, %v130_v16, 0.0  ;;  %v135_v20 = vsel %vm81_vm0, %v131_v18, 0.0 }
  0x9b   :  { %133 = vadd.xlane.f32.xlu1 %v132_v17 }
  0xa1   :  { %119 = vadd.xlane.f32.xlu0 %v118_v19 }
  0xa3   :  { %136 = vadd.xlane.f32.xlu1 %v135_v20 }
 0x10c   :  { %v117_v28 = vpop.xlane.xlu0 %116 }
 0x10d   :  { %v128_v29 = vmul.f32 %v127_v27, %v117_v28 }
 0x10e   :  { %v134_v30 = vpop.xlane.xlu1 %133 }
 0x10f   :  { %v140_v31 = vmul.f32 %v128_v29, %v128_v29  ;;  %v138_v32 = vmul.f32 %v134_v30, %v127_v27  ;;  %v146_v51 = vsub.f32 %v113_v13, %v128_v29 }
 0x111   :  { %v142_v33 = vsub.f32 %v138_v32, %v140_v31 }
 0x113   :  { %v144_v34 = vmax.f32 %v142_v33, 0.0 }
 0x114   :  { %v120_v35 = vpop.xlane.xlu0 %119 }
 0x115   :  { %v148_v36 = vadd.f32 1e-12, %v144_v34  ;;  %v129_v37 = vmul.f32 %v127_v27, %v120_v35 }
 0x116   :  { %v137_v38 = vpop.xlane.xlu1 %136 }
 0x117   :  { %224 = vrsqrt.f32 %v148_v36  ;;  %v141_v39 = vmul.f32 %v129_v37, %v129_v37  ;;  %v139_v40 = vmul.f32 %v137_v38, %v127_v27  ;;  %vm156_vm3 = vweird.f32 %v148_v36 }
 0x118   :  { %v147_v63 = vsub.f32 %v396_v15, %v129_v37 }
 0x119   :  { %v143_v41 = vsub.f32 %v139_v40, %v141_v39 }
 0x11b   :  { %v145_v42 = vmax.f32 %v143_v41, 0.0 }
 0x11d   :  { %v225_v43 = vpop.eup %224  ;;  %v149_v45 = vadd.f32 1e-12, %v145_v42 }
 0x11e   :  { %v151_v44 = vmul.f32 %v225_v43, %v148_v36  ;;  %vm157_vm2 = vweird.f32 %v225_v43 }
 0x11f   :  { %226 = vrsqrt.f32 %v149_v45  ;;  %vm158_vm4 = vmor %vm156_vm3, %vm157_vm2  ;;  %vm166_vm6 = vweird.f32 %v149_v45 }
 0x120   :  { %v152_v46 = vmul.f32 %v225_v43, %v151_v44 }
 0x122   :  { %v153_v47 = vmul.f32 0.5, %v152_v46 }
 0x124   :  { %v154_v48 = vsub.f32 1.5, %v153_v47 }
 0x125   :  { %v227_v49 = vpop.eup %226 }
 0x126   :  { %v155_v50 = vmul.f32 %v225_v43, %v154_v48  ;;  %v161_v52 = vmul.f32 %v227_v49, %v149_v45  ;;  %vm167_vm5 = vweird.f32 %v227_v49 }
 0x127   :  { %vm168_vm7 = vmor %vm166_vm6, %vm167_vm5 }
 0x128   :  { %v159_v54 = vsel %vm158_vm4, %v225_v43, %v155_v50  ;;  %v162_v56 = vmul.f32 %v227_v49, %v161_v52 }
 0x129   :  { %v170_v55 = vmul.f32 %v159_v54, %v146_v51 }
 0x12a   :  { %v163_v58 = vmul.f32 0.5, %v162_v56 }
 0x12b   :  { %v176_v59 = vmul.f32 %v220_v53, %v170_v55 }
 0x12c   :  { %v164_v60 = vsub.f32 1.5, %v163_v58 }
 0x12d   :  { %v182_v61 = vadd.f32 %v221_v57, %v176_v59 }
 0x12e   :  { %v165_v62 = vmul.f32 %v227_v49, %v164_v60 }
 0x12f   :  { %184 = vst.msk [vmem:[#allocation8] sm:$0xff] %vm81_vm0, %v182_v61 }
 0x130   :  { %v169_v0 = vsel %vm168_vm7, %v227_v49, %v165_v62 }
 0x131   :  { %v171_v1 = vmul.f32 %v169_v0, %v147_v63 }
 0x133   :  { %v177_v2 = vmul.f32 %v220_v53, %v171_v1 }
 0x135   :  { %v183_v3 = vadd.f32 %v221_v57, %v177_v2 }
 0x137   :  { %185 = vst.msk [vmem:[#allocation8 + $0x8] sm:$0xff] %vm81_vm0, %v183_v3 }
 0x138   :  { %198 = dma.vmem_to_hbm [thread:$0]  %s191_s16, 256, %s193_s5, [#allocation4], %s331_s29, %s331_s29, %s332_s30  }
 0x139   :  { %328 = dma.done.wait [#allocation4], 256  }
 0x13a   :  { %329 = vsyncadd [#allocation4], 4294967040 }
 0x13b   :  { %203 = vsyncpa [#allocation3], 1 }
 0x13c   :  { %204 = vsyncpa [#allocation6], 1 }
 0x13d   :  { %205 = vsyncpa [#allocation4], 1 }

</bundles_post_ra>
